<compile_context>
chip_gen: v5e
topology: v5e:2x2
jax: 0.10.0
libtpu: 0.0.40
codegen_flags: <defaults>
</compile_context>

<pallas_src>
import functools
import math

import jax
import jax.numpy as jnp
from jax import lax
from jax.experimental import pallas as pl
from jax.experimental.pallas import tpu as pltpu

EPS = 1e-5


def resblock_kernel(x_ref,        # (Cp, L)      L = bn*HW, lane-batched samples
                    mask_ref,     # (9, L)       tap validity masks (0/1 f32), pre-tiled
                    w_ref,        # (3*Cp, 9*Cp) rows 0:2Cp = [w1; shortcut], 2Cp:3Cp = w2
                    ln_ref,       # (8, HW)      rows: g1, bt1, g2, bt2, ge, bte, 0, 0
                    out_ref,      # (Cp, L)
                    patch_scr,    # (9*Cp, L)    im2col scratch (reused for both convs)
                    h1_scr,       # (Cp, L)      relu(LN1(conv1)) activations
                    *, width, hw, bn):
    cp, L = x_ref.shape
    cp2 = 2 * cp

    # Packed weights: one sublane-aligned slab, sliced once.
    w1s = w_ref[0:cp2, :]          # (2Cp, 9Cp): conv1 stacked over the 1x1 shortcut
    w2 = w_ref[cp2:cp2 + cp, :]    # (Cp, 9Cp)

    # LN affine rows -> full (Cp, HW) tiles once (no per-sample re-broadcast).
    g1 = jnp.broadcast_to(ln_ref[0:1, :], (cp, hw))
    bt1 = jnp.broadcast_to(ln_ref[1:2, :], (cp, hw))
    g2 = jnp.broadcast_to(ln_ref[2:3, :], (cp, hw))
    bt2 = jnp.broadcast_to(ln_ref[3:4, :], (cp, hw))
    ge = jnp.broadcast_to(ln_ref[4:5, :], (cp, hw))
    bte = jnp.broadcast_to(ln_ref[5:6, :], (cp, hw))

    inv_hw = 1.0 / hw
    # tap k = kh*3 + kw, spatial offset (kh-1, kw-1) -> flat lane offset
    offsets = [((k // 3) - 1) * width + ((k % 3) - 1) for k in range(9)]

    def layernorm(y, g, b):
        # One-pass variance: both lane reductions issue back-to-back (XLU),
        # breaking the reduce -> subtract -> square -> reduce serial chain.
        s1 = jnp.sum(y, axis=1, keepdims=True)
        s2 = jnp.sum(y * y, axis=1, keepdims=True)
        mean = s1 * inv_hw
        var = s2 * inv_hw - mean * mean
        return (y - mean) * lax.rsqrt(var + EPS) * g + b

    def build_patch(img):
        # img: (Cp, L).  Each shifted tap is an XLU lane rotation of the whole
        # lane-batched slab; rotations that wrap across sample boundaries or
        # image edges land exactly on mask-zeroed positions.
        for k, off in enumerate(offsets):
            rows = slice(k * cp, (k + 1) * cp)       # sublane-aligned (cp = 8m)
            if off == 0:
                patch_scr[rows, :] = img             # centre tap: no shift/mask
            else:
                rolled = pltpu.roll(img, shift=(-off) % L, axis=1)
                patch_scr[rows, :] = rolled * mask_ref[k:k + 1, :]

    x = x_ref[...]

    # conv1 + folded 1x1 shortcut: ONE MXU matmul for the whole sample block.
    build_patch(x)
    y1 = jnp.dot(w1s, patch_scr[...], preferred_element_type=jnp.float32)  # (2Cp, L)

    # Per-sample LN1 + ReLU (conv2's input), stored lane-dense into scratch.
    for n in range(bn):
        seg = slice(n * hw, (n + 1) * hw)
        h1_scr[:, seg] = jnp.maximum(layernorm(y1[0:cp, seg], g1, bt1), 0.0)

    # conv2: ONE matmul for the whole block.
    build_patch(h1_scr[...])
    y2 = jnp.dot(w2, patch_scr[...], preferred_element_type=jnp.float32)   # (Cp, L)

    # Per-sample LN2, shortcut LN, residual add, ReLU; full-tile stores.
    for n in range(bn):
        seg = slice(n * hw, (n + 1) * hw)
        o = layernorm(y2[:, seg], g2, bt2)
        sc = layernorm(y1[cp:cp2, seg], ge, bte)
        out_ref[:, seg] = jnp.maximum(o + sc, 0.0)


@jax.jit
def resblock_forward(x, params):
    """x: (N, Cin, H, W) float32 (NCHW, like PyTorch). Returns (N, Cout, H, W)."""
    N, Cin, H, W = x.shape
    Cout = params["w1"].shape[0]
    HW = H * W
    Cp = -(-max(Cin, Cout) // 8) * 8        # channels padded to a multiple of 8

    # NCHW -> channel-major, lane-batched slab (Cp, N*HW).
    xp = jnp.pad(x.reshape(N, Cin, HW), ((0, 0), (0, Cp - Cin), (0, 0)))
    x_cm = jnp.transpose(xp, (1, 0, 2)).reshape(Cp, N * HW)

    def pad_w3(w):                          # (Co, Ci, 3, 3) -> (Cp, 9*Cp), tap-major
        co, ci = w.shape[0], w.shape[1]
        wt = jnp.transpose(w, (0, 2, 3, 1))                       # (Co, 3, 3, Ci)
        wt = jnp.pad(wt, ((0, Cp - co), (0, 0), (0, 0), (0, Cp - ci)))
        return wt.reshape(Cp, 9 * Cp)

    w1r = pad_w3(params["w1"])
    w2r = pad_w3(params["w2"])
    # 1x1 shortcut folded into conv1: place its weights in the centre-tap columns.
    wer = jnp.pad(params["we"][:, :, 0, 0], ((0, Cp - Cout), (0, Cp - Cin)))
    wsr = jnp.zeros((Cp, 9 * Cp), jnp.float32).at[:, 4 * Cp:5 * Cp].set(wer)
    wslab = jnp.concatenate([w1r, wsr, w2r], axis=0)              # (3Cp, 9Cp)
    # NOTE: conv biases are intentionally dropped (cancelled exactly by the
    # LayerNorm mean subtraction that immediately follows each conv).

    row = lambda a: a.reshape(1, HW)
    lnslab = jnp.concatenate(
        [row(params["g1"]), row(params["bt1"]),
         row(params["g2"]), row(params["bt2"]),
         row(params["ge"]), row(params["bte"]),
         jnp.zeros((2, HW), jnp.float32)], axis=0)                # (8, HW)

    # Tap validity masks (zero out-of-image and row-wrap positions).
    hh = jnp.arange(H)[:, None]
    ww = jnp.arange(W)[None, :]
    mrows = []
    for kh in range(3):
        for kw in range(3):
            dh, dw = kh - 1, kw - 1
            valid = ((hh + dh >= 0) & (hh + dh < H) &
                     (ww + dw >= 0) & (ww + dw < W))
            mrows.append(valid.reshape(HW))
    masks = jnp.stack(mrows).astype(jnp.float32)                  # (9, HW)

    # >= 2 "parallel" grid steps whenever N >= 2 (both TCs busy on v7x); each
    # step still lane-batches bn samples to amortize per-step / matmul overhead.
    bn_cap = max(1, min(8, N // 2))
    bn = max(d for d in range(1, bn_cap + 1) if N % d == 0)
    L = bn * HW
    grid = (N // bn,)
    masks_t = jnp.tile(masks, (1, bn))                            # (9, L)

    full = lambda shape: pl.BlockSpec(shape, lambda i: (0, 0))

    out_cm = pl.pallas_call(
        functools.partial(resblock_kernel, width=W, hw=HW, bn=bn),
        out_shape=jax.ShapeDtypeStruct((Cp, N * HW), jnp.float32),
        grid=grid,
        in_specs=[
            pl.BlockSpec((Cp, L), lambda i: (0, i)),              # x slab
            full((9, L)),                                         # pre-tiled tap masks
            full((3 * Cp, 9 * Cp)),                               # packed conv weights
            full((8, HW)),                                        # packed LN affines
        ],
        out_specs=pl.BlockSpec((Cp, L), lambda i: (0, i)),
        scratch_shapes=[pltpu.VMEM((9 * Cp, L), jnp.float32),     # im2col patch
                        pltpu.VMEM((Cp, L), jnp.float32)],        # relu(LN1) acts
        compiler_params=pltpu.CompilerParams(
            dimension_semantics=("parallel",)),
    )(x_cm, masks_t, wslab, lnslab)

    # (Cp, N*HW) -> (N, Cout, H, W); padded channels are sliced off here so the
    # kernel keeps full-tile stores.
    out = out_cm.reshape(Cp, N, HW).transpose(1, 0, 2)[:, :Cout]
    return out.reshape(N, Cout, H, W)


def init_params(key, ch_in, ch_out, H, W):
    """Deterministic synthetic init (PyTorch-like uniform bounds for convs,
    ones/zeros for LayerNorm, as in nn.Module defaults)."""
    ks = jax.random.split(key, 6)

    def conv_init(kw_key, kb_key, cout, cin, ksz):
        fan_in = cin * ksz * ksz
        bound = 1.0 / math.sqrt(fan_in)
        w = jax.random.uniform(kw_key, (cout, cin, ksz, ksz), jnp.float32,
                               -bound, bound)
        b = jax.random.uniform(kb_key, (cout,), jnp.float32, -bound, bound)
        return w, b

    w1, b1 = conv_init(ks[0], ks[1], ch_out, ch_in, 3)
    w2, b2 = conv_init(ks[2], ks[3], ch_out, ch_out, 3)
    we, be = conv_init(ks[4], ks[5], ch_out, ch_in, 1)
    ones, zeros = jnp.ones((H, W), jnp.float32), jnp.zeros((H, W), jnp.float32)
    return dict(w1=w1, b1=b1, g1=ones, bt1=zeros,
                w2=w2, b2=b2, g2=ones, bt2=zeros,
                we=we, be=be, ge=ones, bte=zeros)


def ref_forward(x, p):
    """Pure-JAX reference matching the PyTorch forward (NCHW, with conv biases)."""
    def ln(y, g, b):
        mean = y.mean(axis=(-2, -1), keepdims=True)
        var = ((y - mean) ** 2).mean(axis=(-2, -1), keepdims=True)
        return (y - mean) / jnp.sqrt(var + EPS) * g + b

    dn = ("NCHW", "OIHW", "NCHW")
    c1 = lax.conv_general_dilated(x, p["w1"], (1, 1), ((1, 1), (1, 1)),
                                  dimension_numbers=dn) + p["b1"][None, :, None, None]
    o = jax.nn.relu(ln(c1, p["g1"], p["bt1"]))
    c2 = lax.conv_general_dilated(o, p["w2"], (1, 1), ((1, 1), (1, 1)),
                                  dimension_numbers=dn) + p["b2"][None, :, None, None]
    o = ln(c2, p["g2"], p["bt2"])
    sc = lax.conv_general_dilated(x, p["we"], (1, 1), ((0, 0), (0, 0)),
                                  dimension_numbers=dn) + p["be"][None, :, None, None]
    sc = ln(sc, p["ge"], p["bte"])
    return jax.nn.relu(o + sc)


if __name__ == "__main__":
    N, CH_IN, CH_OUT, H, W = 2, 4, 8, 16, 16   # resblock(4, 8, stride=1, size=[16, 16])

    key = jax.random.PRNGKey(0)
    kx, kp = jax.random.split(key)
    x = jax.random.normal(kx, (N, CH_IN, H, W), jnp.float32)
    params = init_params(kp, CH_IN, CH_OUT, H, W)

    out = jax.block_until_ready(resblock_forward(x, params))
    ref = jax.block_until_ready(ref_forward(x, params))

    assert out.shape == (N, CH_OUT, H, W), out.shape
    max_err = float(jnp.max(jnp.abs(out - ref)))
    if max_err > 2e-4:
        raise AssertionError(f"mismatch vs reference, max abs err = {max_err}")

    print("KERNEL_OK")
</pallas_src>

<mosaic_0001>
module attributes {stable_mosaic.version = 11 : i64} {
  func.func @resblock_kernel(%arg0: i32, %arg1: memref<8x256xf32, #tpu.memory_space<vmem>>, %arg2: memref<9x256xf32, #tpu.memory_space<vmem>>, %arg3: memref<24x72xf32, #tpu.memory_space<vmem>>, %arg4: memref<8x256xf32, #tpu.memory_space<vmem>>, %arg5: memref<8x256xf32, #tpu.memory_space<vmem>>, %arg6: memref<72x256xf32, #tpu.memory_space<vmem>>, %arg7: memref<8x256xf32, #tpu.memory_space<vmem>>) attributes {dimension_semantics = [#tpu.dimension_semantics<parallel>], iteration_bounds = array<i64: 2>, scalar_prefetch = 0 : i64, scratch_operands = 2 : i64, tpu.core_type = #tpu.core_type<tc>, window_params = [{transform_indices = @transform_0, window_bounds = array<i64: 8, 256>}, {pipeline_mode = #tpu.pipeline_mode<synchronous>, transform_indices = @transform_1, window_bounds = array<i64: 9, 256>}, {pipeline_mode = #tpu.pipeline_mode<synchronous>, transform_indices = @transform_2, window_bounds = array<i64: 24, 72>}, {pipeline_mode = #tpu.pipeline_mode<synchronous>, transform_indices = @transform_3, window_bounds = array<i64: 8, 256>}, {transform_indices = @transform_4, window_bounds = array<i64: 8, 256>}]} {
    %c0 = arith.constant 0 : index
    %c0_0 = arith.constant 0 : index
    %0 = vector.load %arg3[%c0, %c0_0] : memref<24x72xf32, #tpu.memory_space<vmem>>, vector<16x72xf32>
    %c16 = arith.constant 16 : index
    %c0_1 = arith.constant 0 : index
    %1 = vector.load %arg3[%c16, %c0_1] : memref<24x72xf32, #tpu.memory_space<vmem>>, vector<8x72xf32>
    %c0_2 = arith.constant 0 : index
    %c0_3 = arith.constant 0 : index
    %2 = vector.load %arg4[%c0_2, %c0_3] : memref<8x256xf32, #tpu.memory_space<vmem>>, vector<1x256xf32>
    %3 = vector.shape_cast %2 : vector<1x256xf32> to vector<1x256xf32>
    %4 = vector.broadcast %3 : vector<1x256xf32> to vector<8x256xf32>
    %c1 = arith.constant 1 : index
    %c0_4 = arith.constant 0 : index
    %5 = vector.load %arg4[%c1, %c0_4] : memref<8x256xf32, #tpu.memory_space<vmem>>, vector<1x256xf32>
    %6 = vector.shape_cast %5 : vector<1x256xf32> to vector<1x256xf32>
    %7 = vector.broadcast %6 : vector<1x256xf32> to vector<8x256xf32>
    %c2 = arith.constant 2 : index
    %c0_5 = arith.constant 0 : index
    %8 = vector.load %arg4[%c2, %c0_5] : memref<8x256xf32, #tpu.memory_space<vmem>>, vector<1x256xf32>
    %9 = vector.shape_cast %8 : vector<1x256xf32> to vector<1x256xf32>
    %10 = vector.broadcast %9 : vector<1x256xf32> to vector<8x256xf32>
    %c3 = arith.constant 3 : index
    %c0_6 = arith.constant 0 : index
    %11 = vector.load %arg4[%c3, %c0_6] : memref<8x256xf32, #tpu.memory_space<vmem>>, vector<1x256xf32>
    %12 = vector.shape_cast %11 : vector<1x256xf32> to vector<1x256xf32>
    %13 = vector.broadcast %12 : vector<1x256xf32> to vector<8x256xf32>
    %c4 = arith.constant 4 : index
    %c0_7 = arith.constant 0 : index
    %14 = vector.load %arg4[%c4, %c0_7] : memref<8x256xf32, #tpu.memory_space<vmem>>, vector<1x256xf32>
    %15 = vector.shape_cast %14 : vector<1x256xf32> to vector<1x256xf32>
    %16 = vector.broadcast %15 : vector<1x256xf32> to vector<8x256xf32>
    %c5 = arith.constant 5 : index
    %c0_8 = arith.constant 0 : index
    %17 = vector.load %arg4[%c5, %c0_8] : memref<8x256xf32, #tpu.memory_space<vmem>>, vector<1x256xf32>
    %18 = vector.shape_cast %17 : vector<1x256xf32> to vector<1x256xf32>
    %19 = vector.broadcast %18 : vector<1x256xf32> to vector<8x256xf32>
    %c0_9 = arith.constant 0 : index
    %c0_10 = arith.constant 0 : index
    %20 = vector.load %arg1[%c0_9, %c0_10] : memref<8x256xf32, #tpu.memory_space<vmem>>, vector<8x256xf32>
    %c17_i32 = arith.constant 17 : i32
    %21 = tpu.dynamic_rotate %20 by %c17_i32 dim 1 : vector<8x256xf32>, i32 -> vector<8x256xf32>
    %c0_11 = arith.constant 0 : index
    %c0_12 = arith.constant 0 : index
    %22 = vector.load %arg2[%c0_11, %c0_12] : memref<9x256xf32, #tpu.memory_space<vmem>>, vector<1x256xf32>
    %23 = vector.broadcast %22 : vector<1x256xf32> to vector<8x256xf32>
    %24 = arith.mulf %21, %23 : vector<8x256xf32>
    %c0_13 = arith.constant 0 : index
    %c0_14 = arith.constant 0 : index
    %25 = vector.load %arg6[%c0_13, %c0_14] : memref<72x256xf32, #tpu.memory_space<vmem>>, vector<8x256xf32>
    tpu.vector_store %arg6[%c0_13, %c0_14], %24 {strides = array<i32>} : memref<72x256xf32, #tpu.memory_space<vmem>>, vector<8x256xf32>,
    %c16_i32 = arith.constant 16 : i32
    %26 = tpu.dynamic_rotate %20 by %c16_i32 dim 1 : vector<8x256xf32>, i32 -> vector<8x256xf32>
    %c1_15 = arith.constant 1 : index
    %c0_16 = arith.constant 0 : index
    %27 = vector.load %arg2[%c1_15, %c0_16] : memref<9x256xf32, #tpu.memory_space<vmem>>, vector<1x256xf32>
    %28 = vector.broadcast %27 : vector<1x256xf32> to vector<8x256xf32>
    %29 = arith.mulf %26, %28 : vector<8x256xf32>
    %c8 = arith.constant 8 : index
    %c0_17 = arith.constant 0 : index
    %30 = vector.load %arg6[%c8, %c0_17] : memref<72x256xf32, #tpu.memory_space<vmem>>, vector<8x256xf32>
    tpu.vector_store %arg6[%c8, %c0_17], %29 {strides = array<i32>} : memref<72x256xf32, #tpu.memory_space<vmem>>, vector<8x256xf32>,
    %c15_i32 = arith.constant 15 : i32
    %31 = tpu.dynamic_rotate %20 by %c15_i32 dim 1 : vector<8x256xf32>, i32 -> vector<8x256xf32>
    %c2_18 = arith.constant 2 : index
    %c0_19 = arith.constant 0 : index
    %32 = vector.load %arg2[%c2_18, %c0_19] : memref<9x256xf32, #tpu.memory_space<vmem>>, vector<1x256xf32>
    %33 = vector.broadcast %32 : vector<1x256xf32> to vector<8x256xf32>
    %34 = arith.mulf %31, %33 : vector<8x256xf32>
    %c16_20 = arith.constant 16 : index
    %c0_21 = arith.constant 0 : index
    %35 = vector.load %arg6[%c16_20, %c0_21] : memref<72x256xf32, #tpu.memory_space<vmem>>, vector<8x256xf32>
    tpu.vector_store %arg6[%c16_20, %c0_21], %34 {strides = array<i32>} : memref<72x256xf32, #tpu.memory_space<vmem>>, vector<8x256xf32>,
    %c1_i32 = arith.constant 1 : i32
    %36 = tpu.dynamic_rotate %20 by %c1_i32 dim 1 : vector<8x256xf32>, i32 -> vector<8x256xf32>
    %c3_22 = arith.constant 3 : index
    %c0_23 = arith.constant 0 : index
    %37 = vector.load %arg2[%c3_22, %c0_23] : memref<9x256xf32, #tpu.memory_space<vmem>>, vector<1x256xf32>
    %38 = vector.broadcast %37 : vector<1x256xf32> to vector<8x256xf32>
    %39 = arith.mulf %36, %38 : vector<8x256xf32>
    %c24 = arith.constant 24 : index
    %c0_24 = arith.constant 0 : index
    %40 = vector.load %arg6[%c24, %c0_24] : memref<72x256xf32, #tpu.memory_space<vmem>>, vector<8x256xf32>
    tpu.vector_store %arg6[%c24, %c0_24], %39 {strides = array<i32>} : memref<72x256xf32, #tpu.memory_space<vmem>>, vector<8x256xf32>,
    %c32 = arith.constant 32 : index
    %c0_25 = arith.constant 0 : index
    %41 = vector.load %arg6[%c32, %c0_25] : memref<72x256xf32, #tpu.memory_space<vmem>>, vector<8x256xf32>
    tpu.vector_store %arg6[%c32, %c0_25], %20 {strides = array<i32>} : memref<72x256xf32, #tpu.memory_space<vmem>>, vector<8x256xf32>,
    %c255_i32 = arith.constant 255 : i32
    %42 = tpu.dynamic_rotate %20 by %c255_i32 dim 1 : vector<8x256xf32>, i32 -> vector<8x256xf32>
    %c5_26 = arith.constant 5 : index
    %c0_27 = arith.constant 0 : index
    %43 = vector.load %arg2[%c5_26, %c0_27] : memref<9x256xf32, #tpu.memory_space<vmem>>, vector<1x256xf32>
    %44 = vector.broadcast %43 : vector<1x256xf32> to vector<8x256xf32>
    %45 = arith.mulf %42, %44 : vector<8x256xf32>
    %c40 = arith.constant 40 : index
    %c0_28 = arith.constant 0 : index
    %46 = vector.load %arg6[%c40, %c0_28] : memref<72x256xf32, #tpu.memory_space<vmem>>, vector<8x256xf32>
    tpu.vector_store %arg6[%c40, %c0_28], %45 {strides = array<i32>} : memref<72x256xf32, #tpu.memory_space<vmem>>, vector<8x256xf32>,
    %c241_i32 = arith.constant 241 : i32
    %47 = tpu.dynamic_rotate %20 by %c241_i32 dim 1 : vector<8x256xf32>, i32 -> vector<8x256xf32>
    %c6 = arith.constant 6 : index
    %c0_29 = arith.constant 0 : index
    %48 = vector.load %arg2[%c6, %c0_29] : memref<9x256xf32, #tpu.memory_space<vmem>>, vector<1x256xf32>
    %49 = vector.broadcast %48 : vector<1x256xf32> to vector<8x256xf32>
    %50 = arith.mulf %47, %49 : vector<8x256xf32>
    %c48 = arith.constant 48 : index
    %c0_30 = arith.constant 0 : index
    %51 = vector.load %arg6[%c48, %c0_30] : memref<72x256xf32, #tpu.memory_space<vmem>>, vector<8x256xf32>
    tpu.vector_store %arg6[%c48, %c0_30], %50 {strides = array<i32>} : memref<72x256xf32, #tpu.memory_space<vmem>>, vector<8x256xf32>,
    %c240_i32 = arith.constant 240 : i32
    %52 = tpu.dynamic_rotate %20 by %c240_i32 dim 1 : vector<8x256xf32>, i32 -> vector<8x256xf32>
    %c7 = arith.constant 7 : index
    %c0_31 = arith.constant 0 : index
    %53 = vector.load %arg2[%c7, %c0_31] : memref<9x256xf32, #tpu.memory_space<vmem>>, vector<1x256xf32>
    %54 = vector.broadcast %53 : vector<1x256xf32> to vector<8x256xf32>
    %55 = arith.mulf %52, %54 : vector<8x256xf32>
    %c56 = arith.constant 56 : index
    %c0_32 = arith.constant 0 : index
    %56 = vector.load %arg6[%c56, %c0_32] : memref<72x256xf32, #tpu.memory_space<vmem>>, vector<8x256xf32>
    tpu.vector_store %arg6[%c56, %c0_32], %55 {strides = array<i32>} : memref<72x256xf32, #tpu.memory_space<vmem>>, vector<8x256xf32>,
    %c239_i32 = arith.constant 239 : i32
    %57 = tpu.dynamic_rotate %20 by %c239_i32 dim 1 : vector<8x256xf32>, i32 -> vector<8x256xf32>
    %c8_33 = arith.constant 8 : index
    %c0_34 = arith.constant 0 : index
    %58 = vector.load %arg2[%c8_33, %c0_34] : memref<9x256xf32, #tpu.memory_space<vmem>>, vector<1x256xf32>
    %59 = vector.broadcast %58 : vector<1x256xf32> to vector<8x256xf32>
    %60 = arith.mulf %57, %59 : vector<8x256xf32>
    %c64 = arith.constant 64 : index
    %c0_35 = arith.constant 0 : index
    %61 = vector.load %arg6[%c64, %c0_35] : memref<72x256xf32, #tpu.memory_space<vmem>>, vector<8x256xf32>
    tpu.vector_store %arg6[%c64, %c0_35], %60 {strides = array<i32>} : memref<72x256xf32, #tpu.memory_space<vmem>>, vector<8x256xf32>,
    %c0_36 = arith.constant 0 : index
    %c0_37 = arith.constant 0 : index
    %62 = vector.load %arg6[%c0_36, %c0_37] : memref<72x256xf32, #tpu.memory_space<vmem>>, vector<72x256xf32>
    %cst = arith.constant dense<0.000000e+00> : vector<16x256xf32>
    %63 = tpu.matmul %0, %62, %cst {dimension_numbers = #tpu.dot_dimension_numbers<[1], [0], [0], [1], [0, 0, 1, 1], [], []>} : vector<16x72xf32>, vector<72x256xf32>, vector<16x256xf32> -> vector<16x256xf32>
    %64 = vector.extract_strided_slice %63 {offsets = [0, 0], sizes = [8, 256], strides = [1, 1]} : vector<16x256xf32> to vector<8x256xf32>
    %cst_38 = arith.constant dense<0.000000e+00> : vector<8xf32>
    %65 = vector.multi_reduction <add>, %64, %cst_38 [1] : vector<8x256xf32> to vector<8xf32>
    %66 = vector.shape_cast %65 : vector<8xf32> to vector<8x1xf32>
    %67 = arith.mulf %64, %64 : vector<8x256xf32>
    %cst_39 = arith.constant dense<0.000000e+00> : vector<8xf32>
    %68 = vector.multi_reduction <add>, %67, %cst_39 [1] : vector<8x256xf32> to vector<8xf32>
    %69 = vector.shape_cast %68 : vector<8xf32> to vector<8x1xf32>
    %cst_40 = arith.constant 3.906250e-03 : f32
    %70 = vector.broadcast %cst_40 : f32 to vector<8x1xf32>
    %71 = arith.mulf %66, %70 : vector<8x1xf32>
    %cst_41 = arith.constant 3.906250e-03 : f32
    %72 = vector.broadcast %cst_41 : f32 to vector<8x1xf32>
    %73 = arith.mulf %69, %72 : vector<8x1xf32>
    %74 = arith.mulf %71, %71 : vector<8x1xf32>
    %75 = arith.subf %73, %74 : vector<8x1xf32>
    %76 = vector.broadcast %71 : vector<8x1xf32> to vector<8x256xf32>
    %77 = arith.subf %64, %76 : vector<8x256xf32>
    %cst_42 = arith.constant 9.99999974E-6 : f32
    %78 = vector.broadcast %cst_42 : f32 to vector<8x1xf32>
    %79 = arith.addf %75, %78 : vector<8x1xf32>
    %80 = math.rsqrt %79 : vector<8x1xf32>
    %81 = vector.broadcast %80 : vector<8x1xf32> to vector<8x256xf32>
    %82 = arith.mulf %77, %81 : vector<8x256xf32>
    %83 = arith.mulf %82, %4 : vector<8x256xf32>
    %84 = arith.addf %83, %7 : vector<8x256xf32>
    %cst_43 = arith.constant 0.000000e+00 : f32
    %85 = vector.broadcast %cst_43 : f32 to vector<8x256xf32>
    %86 = arith.maximumf %84, %85 : vector<8x256xf32>
    %c0_44 = arith.constant 0 : index
    %c0_45 = arith.constant 0 : index
    %87 = vector.load %arg7[%c0_44, %c0_45] : memref<8x256xf32, #tpu.memory_space<vmem>>, vector<8x256xf32>
    tpu.vector_store %arg7[%c0_44, %c0_45], %86 {strides = array<i32>} : memref<8x256xf32, #tpu.memory_space<vmem>>, vector<8x256xf32>,
    %c0_46 = arith.constant 0 : index
    %c0_47 = arith.constant 0 : index
    %88 = vector.load %arg7[%c0_46, %c0_47] : memref<8x256xf32, #tpu.memory_space<vmem>>, vector<8x256xf32>
    %c17_i32_48 = arith.constant 17 : i32
    %89 = tpu.dynamic_rotate %88 by %c17_i32_48 dim 1 : vector<8x256xf32>, i32 -> vector<8x256xf32>
    %c0_49 = arith.constant 0 : index
    %c0_50 = arith.constant 0 : index
    %90 = vector.load %arg2[%c0_49, %c0_50] : memref<9x256xf32, #tpu.memory_space<vmem>>, vector<1x256xf32>
    %91 = vector.broadcast %90 : vector<1x256xf32> to vector<8x256xf32>
    %92 = arith.mulf %89, %91 : vector<8x256xf32>
    %c0_51 = arith.constant 0 : index
    %c0_52 = arith.constant 0 : index
    %93 = vector.load %arg6[%c0_51, %c0_52] : memref<72x256xf32, #tpu.memory_space<vmem>>, vector<8x256xf32>
    tpu.vector_store %arg6[%c0_51, %c0_52], %92 {strides = array<i32>} : memref<72x256xf32, #tpu.memory_space<vmem>>, vector<8x256xf32>,
    %c16_i32_53 = arith.constant 16 : i32
    %94 = tpu.dynamic_rotate %88 by %c16_i32_53 dim 1 : vector<8x256xf32>, i32 -> vector<8x256xf32>
    %c1_54 = arith.constant 1 : index
    %c0_55 = arith.constant 0 : index
    %95 = vector.load %arg2[%c1_54, %c0_55] : memref<9x256xf32, #tpu.memory_space<vmem>>, vector<1x256xf32>
    %96 = vector.broadcast %95 : vector<1x256xf32> to vector<8x256xf32>
    %97 = arith.mulf %94, %96 : vector<8x256xf32>
    %c8_56 = arith.constant 8 : index
    %c0_57 = arith.constant 0 : index
    %98 = vector.load %arg6[%c8_56, %c0_57] : memref<72x256xf32, #tpu.memory_space<vmem>>, vector<8x256xf32>
    tpu.vector_store %arg6[%c8_56, %c0_57], %97 {strides = array<i32>} : memref<72x256xf32, #tpu.memory_space<vmem>>, vector<8x256xf32>,
    %c15_i32_58 = arith.constant 15 : i32
    %99 = tpu.dynamic_rotate %88 by %c15_i32_58 dim 1 : vector<8x256xf32>, i32 -> vector<8x256xf32>
    %c2_59 = arith.constant 2 : index
    %c0_60 = arith.constant 0 : index
    %100 = vector.load %arg2[%c2_59, %c0_60] : memref<9x256xf32, #tpu.memory_space<vmem>>, vector<1x256xf32>
    %101 = vector.broadcast %100 : vector<1x256xf32> to vector<8x256xf32>
    %102 = arith.mulf %99, %101 : vector<8x256xf32>
    %c16_61 = arith.constant 16 : index
    %c0_62 = arith.constant 0 : index
    %103 = vector.load %arg6[%c16_61, %c0_62] : memref<72x256xf32, #tpu.memory_space<vmem>>, vector<8x256xf32>
    tpu.vector_store %arg6[%c16_61, %c0_62], %102 {strides = array<i32>} : memref<72x256xf32, #tpu.memory_space<vmem>>, vector<8x256xf32>,
    %c1_i32_63 = arith.constant 1 : i32
    %104 = tpu.dynamic_rotate %88 by %c1_i32_63 dim 1 : vector<8x256xf32>, i32 -> vector<8x256xf32>
    %c3_64 = arith.constant 3 : index
    %c0_65 = arith.constant 0 : index
    %105 = vector.load %arg2[%c3_64, %c0_65] : memref<9x256xf32, #tpu.memory_space<vmem>>, vector<1x256xf32>
    %106 = vector.broadcast %105 : vector<1x256xf32> to vector<8x256xf32>
    %107 = arith.mulf %104, %106 : vector<8x256xf32>
    %c24_66 = arith.constant 24 : index
    %c0_67 = arith.constant 0 : index
    %108 = vector.load %arg6[%c24_66, %c0_67] : memref<72x256xf32, #tpu.memory_space<vmem>>, vector<8x256xf32>
    tpu.vector_store %arg6[%c24_66, %c0_67], %107 {strides = array<i32>} : memref<72x256xf32, #tpu.memory_space<vmem>>, vector<8x256xf32>,
    %c32_68 = arith.constant 32 : index
    %c0_69 = arith.constant 0 : index
    %109 = vector.load %arg6[%c32_68, %c0_69] : memref<72x256xf32, #tpu.memory_space<vmem>>, vector<8x256xf32>
    tpu.vector_store %arg6[%c32_68, %c0_69], %88 {strides = array<i32>} : memref<72x256xf32, #tpu.memory_space<vmem>>, vector<8x256xf32>,
    %c255_i32_70 = arith.constant 255 : i32
    %110 = tpu.dynamic_rotate %88 by %c255_i32_70 dim 1 : vector<8x256xf32>, i32 -> vector<8x256xf32>
    %c5_71 = arith.constant 5 : index
    %c0_72 = arith.constant 0 : index
    %111 = vector.load %arg2[%c5_71, %c0_72] : memref<9x256xf32, #tpu.memory_space<vmem>>, vector<1x256xf32>
    %112 = vector.broadcast %111 : vector<1x256xf32> to vector<8x256xf32>
    %113 = arith.mulf %110, %112 : vector<8x256xf32>
    %c40_73 = arith.constant 40 : index
    %c0_74 = arith.constant 0 : index
    %114 = vector.load %arg6[%c40_73, %c0_74] : memref<72x256xf32, #tpu.memory_space<vmem>>, vector<8x256xf32>
    tpu.vector_store %arg6[%c40_73, %c0_74], %113 {strides = array<i32>} : memref<72x256xf32, #tpu.memory_space<vmem>>, vector<8x256xf32>,
    %c241_i32_75 = arith.constant 241 : i32
    %115 = tpu.dynamic_rotate %88 by %c241_i32_75 dim 1 : vector<8x256xf32>, i32 -> vector<8x256xf32>
    %c6_76 = arith.constant 6 : index
    %c0_77 = arith.constant 0 : index
    %116 = vector.load %arg2[%c6_76, %c0_77] : memref<9x256xf32, #tpu.memory_space<vmem>>, vector<1x256xf32>
    %117 = vector.broadcast %116 : vector<1x256xf32> to vector<8x256xf32>
    %118 = arith.mulf %115, %117 : vector<8x256xf32>
    %c48_78 = arith.constant 48 : index
    %c0_79 = arith.constant 0 : index
    %119 = vector.load %arg6[%c48_78, %c0_79] : memref<72x256xf32, #tpu.memory_space<vmem>>, vector<8x256xf32>
    tpu.vector_store %arg6[%c48_78, %c0_79], %118 {strides = array<i32>} : memref<72x256xf32, #tpu.memory_space<vmem>>, vector<8x256xf32>,
    %c240_i32_80 = arith.constant 240 : i32
    %120 = tpu.dynamic_rotate %88 by %c240_i32_80 dim 1 : vector<8x256xf32>, i32 -> vector<8x256xf32>
    %c7_81 = arith.constant 7 : index
    %c0_82 = arith.constant 0 : index
    %121 = vector.load %arg2[%c7_81, %c0_82] : memref<9x256xf32, #tpu.memory_space<vmem>>, vector<1x256xf32>
    %122 = vector.broadcast %121 : vector<1x256xf32> to vector<8x256xf32>
    %123 = arith.mulf %120, %122 : vector<8x256xf32>
    %c56_83 = arith.constant 56 : index
    %c0_84 = arith.constant 0 : index
    %124 = vector.load %arg6[%c56_83, %c0_84] : memref<72x256xf32, #tpu.memory_space<vmem>>, vector<8x256xf32>
    tpu.vector_store %arg6[%c56_83, %c0_84], %123 {strides = array<i32>} : memref<72x256xf32, #tpu.memory_space<vmem>>, vector<8x256xf32>,
    %c239_i32_85 = arith.constant 239 : i32
    %125 = tpu.dynamic_rotate %88 by %c239_i32_85 dim 1 : vector<8x256xf32>, i32 -> vector<8x256xf32>
    %c8_86 = arith.constant 8 : index
    %c0_87 = arith.constant 0 : index
    %126 = vector.load %arg2[%c8_86, %c0_87] : memref<9x256xf32, #tpu.memory_space<vmem>>, vector<1x256xf32>
    %127 = vector.broadcast %126 : vector<1x256xf32> to vector<8x256xf32>
    %128 = arith.mulf %125, %127 : vector<8x256xf32>
    %c64_88 = arith.constant 64 : index
    %c0_89 = arith.constant 0 : index
    %129 = vector.load %arg6[%c64_88, %c0_89] : memref<72x256xf32, #tpu.memory_space<vmem>>, vector<8x256xf32>
    tpu.vector_store %arg6[%c64_88, %c0_89], %128 {strides = array<i32>} : memref<72x256xf32, #tpu.memory_space<vmem>>, vector<8x256xf32>,
    %c0_90 = arith.constant 0 : index
    %c0_91 = arith.constant 0 : index
    %130 = vector.load %arg6[%c0_90, %c0_91] : memref<72x256xf32, #tpu.memory_space<vmem>>, vector<72x256xf32>
    %cst_92 = arith.constant dense<0.000000e+00> : vector<8x256xf32>
    %131 = tpu.matmul %1, %130, %cst_92 {dimension_numbers = #tpu.dot_dimension_numbers<[1], [0], [0], [1], [0, 0, 1, 1], [], []>} : vector<8x72xf32>, vector<72x256xf32>, vector<8x256xf32> -> vector<8x256xf32>
    %cst_93 = arith.constant dense<0.000000e+00> : vector<8xf32>
    %132 = vector.multi_reduction <add>, %131, %cst_93 [1] : vector<8x256xf32> to vector<8xf32>
    %133 = vector.shape_cast %132 : vector<8xf32> to vector<8x1xf32>
    %134 = arith.mulf %131, %131 : vector<8x256xf32>
    %cst_94 = arith.constant dense<0.000000e+00> : vector<8xf32>
    %135 = vector.multi_reduction <add>, %134, %cst_94 [1] : vector<8x256xf32> to vector<8xf32>
    %136 = vector.shape_cast %135 : vector<8xf32> to vector<8x1xf32>
    %cst_95 = arith.constant 3.906250e-03 : f32
    %137 = vector.broadcast %cst_95 : f32 to vector<8x1xf32>
    %138 = arith.mulf %133, %137 : vector<8x1xf32>
    %cst_96 = arith.constant 3.906250e-03 : f32
    %139 = vector.broadcast %cst_96 : f32 to vector<8x1xf32>
    %140 = arith.mulf %136, %139 : vector<8x1xf32>
    %141 = arith.mulf %138, %138 : vector<8x1xf32>
    %142 = arith.subf %140, %141 : vector<8x1xf32>
    %143 = vector.broadcast %138 : vector<8x1xf32> to vector<8x256xf32>
    %144 = arith.subf %131, %143 : vector<8x256xf32>
    %cst_97 = arith.constant 9.99999974E-6 : f32
    %145 = vector.broadcast %cst_97 : f32 to vector<8x1xf32>
    %146 = arith.addf %142, %145 : vector<8x1xf32>
    %147 = math.rsqrt %146 : vector<8x1xf32>
    %148 = vector.broadcast %147 : vector<8x1xf32> to vector<8x256xf32>
    %149 = arith.mulf %144, %148 : vector<8x256xf32>
    %150 = arith.mulf %149, %10 : vector<8x256xf32>
    %151 = arith.addf %150, %13 : vector<8x256xf32>
    %152 = vector.extract_strided_slice %63 {offsets = [8, 0], sizes = [8, 256], strides = [1, 1]} : vector<16x256xf32> to vector<8x256xf32>
    %cst_98 = arith.constant dense<0.000000e+00> : vector<8xf32>
    %153 = vector.multi_reduction <add>, %152, %cst_98 [1] : vector<8x256xf32> to vector<8xf32>
    %154 = vector.shape_cast %153 : vector<8xf32> to vector<8x1xf32>
    %155 = arith.mulf %152, %152 : vector<8x256xf32>
    %cst_99 = arith.constant dense<0.000000e+00> : vector<8xf32>
    %156 = vector.multi_reduction <add>, %155, %cst_99 [1] : vector<8x256xf32> to vector<8xf32>
    %157 = vector.shape_cast %156 : vector<8xf32> to vector<8x1xf32>
    %cst_100 = arith.constant 3.906250e-03 : f32
    %158 = vector.broadcast %cst_100 : f32 to vector<8x1xf32>
    %159 = arith.mulf %154, %158 : vector<8x1xf32>
    %cst_101 = arith.constant 3.906250e-03 : f32
    %160 = vector.broadcast %cst_101 : f32 to vector<8x1xf32>
    %161 = arith.mulf %157, %160 : vector<8x1xf32>
    %162 = arith.mulf %159, %159 : vector<8x1xf32>
    %163 = arith.subf %161, %162 : vector<8x1xf32>
    %164 = vector.broadcast %159 : vector<8x1xf32> to vector<8x256xf32>
    %165 = arith.subf %152, %164 : vector<8x256xf32>
    %cst_102 = arith.constant 9.99999974E-6 : f32
    %166 = vector.broadcast %cst_102 : f32 to vector<8x1xf32>
    %167 = arith.addf %163, %166 : vector<8x1xf32>
    %168 = math.rsqrt %167 : vector<8x1xf32>
    %169 = vector.broadcast %168 : vector<8x1xf32> to vector<8x256xf32>
    %170 = arith.mulf %165, %169 : vector<8x256xf32>
    %171 = arith.mulf %170, %16 : vector<8x256xf32>
    %172 = arith.addf %171, %19 : vector<8x256xf32>
    %173 = arith.addf %151, %172 : vector<8x256xf32>
    %cst_103 = arith.constant 0.000000e+00 : f32
    %174 = vector.broadcast %cst_103 : f32 to vector<8x256xf32>
    %175 = arith.maximumf %173, %174 : vector<8x256xf32>
    %c0_104 = arith.constant 0 : index
    %c0_105 = arith.constant 0 : index
    %176 = vector.load %arg5[%c0_104, %c0_105] : memref<8x256xf32, #tpu.memory_space<vmem>>, vector<8x256xf32>
    tpu.vector_store %arg5[%c0_104, %c0_105], %175 {strides = array<i32>} : memref<8x256xf32, #tpu.memory_space<vmem>>, vector<8x256xf32>,
    return
  }
  func.func @transform_0(%arg0: i32) -> (i32, i32) {
    %c0_i32 = arith.constant 0 : i32
    %c0_i32_0 = arith.constant 0 : i32
    return %c0_i32, %arg0 : i32, i32
  }
  func.func @transform_1(%arg0: i32) -> (i32, i32) {
    %c0_i32 = arith.constant 0 : i32
    %c0_i32_0 = arith.constant 0 : i32
    %c0_i32_1 = arith.constant 0 : i32
    return %c0_i32, %c0_i32_0 : i32, i32
  }
  func.func @transform_2(%arg0: i32) -> (i32, i32) {
    %c0_i32 = arith.constant 0 : i32
    %c0_i32_0 = arith.constant 0 : i32
    %c0_i32_1 = arith.constant 0 : i32
    return %c0_i32, %c0_i32_0 : i32, i32
  }
  func.func @transform_3(%arg0: i32) -> (i32, i32) {
    %c0_i32 = arith.constant 0 : i32
    %c0_i32_0 = arith.constant 0 : i32
    %c0_i32_1 = arith.constant 0 : i32
    return %c0_i32, %c0_i32_0 : i32, i32
  }
  func.func @transform_4(%arg0: i32) -> (i32, i32) {
    %c0_i32 = arith.constant 0 : i32
    %c0_i32_0 = arith.constant 0 : i32
    return %c0_i32, %arg0 : i32, i32
  }
}

</mosaic_0001>

<bundles_post_ra>
// kernel: resblock_forward.1
= control target key start
LH: loop header
LB: loop body
LE: loop exit
PB: predicated region body
PF: predicated region fallthrough
CT: control target
= control target key end

     0   :  { %s916_s15 = smov 0   ;;  %s1183_s0 = inlined_call_operand.vmem [shape: f32[8,512], index: 0, kind: input, shape index: {}]   ;;  %s1184_s1 = inlined_call_operand.vmem [shape: f32[9,256], index: 1, kind: input, shape index: {}]   ;;  %s1185_s2 = inlined_call_operand.vmem [shape: f32[24,72], index: 2, kind: input, shape index: {}]   ;;  %s1186_s3 = inlined_call_operand.vmem [shape: f32[8,256], index: 3, kind: input, shape index: {}]   ;;  %s1187_s4 = inlined_call_operand.vmem [shape: f32[8,512], index: 4, kind: output, shape index: {}]  }
   0x1 LB: > { %s817_s16 = sadd.s32 4294967295, %s881_s15   ;;  %p821_p0 = scmp.ge.s32.totalorder %s881_s15, 1  ;;  %s881_s15 = sphi %s916_s15, %s14_s15  }
   0x2   : > { %p163_p1 = scmp.lt.s32.totalorder %s881_s15, 3 }
   0x4   : > { %p164_p2 = pnand %p821_p0, %p163_p1 }
   0x5   : > { %s822_s17 = sshll.u32 (!%p164_p2), %s817_s16, 1  ;;  %s883_s22 = smov (!%p164_p2), 112  }
   0x6   : > { %167 = sbr.rel (%p164_p2) target bundleno = 938 (0x3aa), region = 36  ;;  %p190_p3 = scmp.lt.s32.totalorder (!%p164_p2), %s822_s17, 3 }
   0x7   : > { %s884_s23 = smov (!%p164_p2), 111   ;;  %s885_s24 = smov (!%p164_p2), 113  }
   0x8   : > { %s886_s25 = smov (!%p164_p2), 127   ;;  %s887_s26 = smov (!%p164_p2), 1  }
   0x9   : > { %s888_s27 = smov (!%p164_p2), 15   ;;  %s889_s28 = smov (!%p164_p2), 16  }
   0xa   : > { %s890_s29 = smov (!%p164_p2), 17  }
   0xb   : > { %s1189_s17 = smov (!%p190_p3, %s822_s17), 3  ;;  %v251_v3 = vlaneseq  ;;  %v837_v7 = vld [vmem:[%s1184_s1 + $0x10] ss:$8 sm:$0x3]  ;;  %vm412_vm8 = vcmask 588800  }
   0xc   : > { %s823_s18 = sshll.u32 %s1189_s17, 3  ;;  %v836_v9 = vld [vmem:[%s1184_s1 + $0x7] ss:$8 sm:$0x3]  ;;  %v386_v10 = vperm.slane %v837_v7, 0  ;;  %v387_v11 = vperm.slane %v837_v7, 1 }
   0xd   : > { %s193_s21 = scalar_lea.vmem %s1183_s0, %s823_s18  ;;  %v968_v6 = vand.u32 127, %v251_v3  ;;  %v835_v12 = vld [vmem:[%s1184_s1 + $0x6] ss:$8 sm:$0x3]  ;;  %v368_v15 = vperm.slane %v836_v9, 0  ;;  %v369_v16 = vperm.slane %v836_v9, 1 }
   0xe   : > { %v932_v0 = vld [vmem:[%s193_s21] sm:$0xff]  ;;  %v940_v1 = vld [vmem:[%s193_s21 + $0x8] sm:$0xff]  ;;  %v350_v23 = vperm.slane %v835_v12, 0  ;;  %v351_v24 = vperm.slane %v835_v12, 1 }
   0xf   : > { %358 = vrot.lane.b32.xlu1 %v932_v0, %s883_s22  ;;  %376 = vrot.lane.b32.xlu0 %v932_v0, %s884_s23  ;;  %vm362_vm0 = vcmp.lt.s32.totalorder %v968_v6, 112  ;;  %vm380_vm1 = vcmp.lt.s32.totalorder %v968_v6, 111  ;;  %vm344_vm2 = vcmp.lt.s32.totalorder %v968_v6, 113  ;;  %v834_v27 = vld [vmem:[%s1184_s1 + $0x5] ss:$8 sm:$0x3] }
  0x10   : > { %340 = vrot.lane.b32.xlu2 %v932_v0, %s885_s24  ;;  %vm326_vm3 = vcmp.lt.s32.totalorder %v968_v6, 127  ;;  %v332_v33 = vperm.slane %v834_v27, 0  ;;  %v333_v34 = vperm.slane %v834_v27, 1  ;;  %v833_v41 = vld [vmem:[%s1184_s1 + $0x3] ss:$8 sm:$0x3] }
  0x11   : > { %v832_v42 = vld [vmem:[%s1184_s1 + $0x2] ss:$8 sm:$0x3]  ;;  %vm306_vm4 = vcmp.lt.s32.totalorder %v968_v6, 1  ;;  %v312_v43 = vperm.slane %v833_v41, 0  ;;  %v313_v44 = vperm.slane %v833_v41, 1 }
  0x12   : > { %vm288_vm5 = vcmp.lt.s32.totalorder %v968_v6, 15  ;;  %v294_v46 = vperm.slane %v832_v42, 0  ;;  %v295_v47 = vperm.slane %v832_v42, 1  ;;  %v831_v58 = vld [vmem:[%s1184_s1 + $0x1] ss:$8 sm:$0x3] }
  0x13   : > { %vm270_vm6 = vcmp.lt.s32.totalorder %v968_v6, 16  ;;  %v276_v59 = vperm.slane %v831_v58, 0  ;;  %v277_v60 = vperm.slane %v831_v58, 1  ;;  %v256_v3 = vld [vmem:[%s1184_s1] ss:$8 sm:$0x3] }
  0x14   : > { %vm253_vm7 = vcmp.lt.s32.totalorder %v968_v6, 17  ;;  %v259_v7 = vperm.slane %v256_v3, 1 }
  0x17   : > { %360 = vrot.lane.b32.xlu1 %v940_v1, %s883_s22  ;;  %378 = vrot.lane.b32.xlu0 %v940_v1, %s884_s23 }
  0x18   : > { %342 = vrot.lane.b32.xlu2 %v940_v1, %s885_s24 }
  0x1f   : > { %324 = vrot.lane.b32.xlu1 %v940_v1, %s886_s25  ;;  %322 = vrot.lane.b32.xlu0 %v932_v0, %s886_s25 }
  0x20   : > { %302 = vrot.lane.b32.xlu2 %v932_v0, %s887_s26 }
  0x27   : > { %284 = vrot.lane.b32.xlu1 %v932_v0, %s888_s27  ;;  %304 = vrot.lane.b32.xlu0 %v940_v1, %s887_s26 }
  0x28   : > { %286 = vrot.lane.b32.xlu2 %v940_v1, %s888_s27 }
  0x2f   : > { %268 = vrot.lane.b32.xlu1 %v940_v1, %s889_s28  ;;  %266 = vrot.lane.b32.xlu0 %v932_v0, %s889_s28 }
  0x30   : > { %247 = vrot.lane.b32.xlu2 %v932_v0, %s890_s29 }
  0x37   : > { %249 = vrot.lane.b32.xlu0 %v940_v1, %s890_s29 }
  0x6a   : > { %v341_v2 = vpop.permute.xlu2 %340 }
  0x72   : > { %v343_v8 = vpop.permute.xlu2 %342 }
  0x73   : > { %v345_v25 = vsel %vm344_vm2, %v341_v2, %v343_v8  ;;  %v346_v26 = vsel %vm344_vm2, %v343_v8, %v341_v2 }
  0x74   : > { %v354_v31 = vmul.f32 %v350_v23, %v345_v25  ;;  %v355_v32 = vmul.f32 %v351_v24, %v346_v26 }
  0x7a   : > { %v303_v30 = vpop.permute.xlu2 %302 }
  0x81   : > { %v359_v4 = vpop.permute.xlu1 %358  ;;  %v377_v5 = vpop.permute.xlu0 %376 }
  0x82   : > { %v287_v45 = vpop.permute.xlu2 %286 }
  0x89   : > { %v361_v13 = vpop.permute.xlu1 %360  ;;  %v379_v14 = vpop.permute.xlu0 %378 }
  0x8a   : > { %v363_v17 = vsel %vm362_vm0, %v359_v4, %v361_v13  ;;  %v364_v18 = vsel %vm362_vm0, %v361_v13, %v359_v4  ;;  %v381_v19 = vsel %vm380_vm1, %v377_v5, %v379_v14  ;;  %v382_v20 = vsel %vm380_vm1, %v379_v14, %v377_v5  ;;  %v248_v4 = vpop.permute.xlu2 %247  ;;  %v201_v13 = vld [vmem:[%s1185_s2] sm:$0xff] }
  0x8b   : > { %v390_v21 = vmul.f32 %v386_v10, %v381_v19  ;;  %v391_v22 = vmul.f32 %v387_v11, %v382_v20  ;;  %v372_v28 = vmul.f32 %v368_v15, %v363_v17  ;;  %v373_v29 = vmul.f32 %v369_v16, %v364_v18 }
  0x8c   : > { %v258_v5 = vperm.slane %v256_v3, 0 }
  0x8d   : > { %426 = vmatpush.msra.mxu0 %v390_v21  ;;  %449 = vmatpush.msra.mxu1 %v391_v22 }
  0x8f   : > { %427 = vmatpush.msra.mxu0 %v372_v28  ;;  %450 = vmatpush.msra.mxu1 %v373_v29 }
  0x91   : > { %v325_v35 = vpop.permute.xlu1 %324  ;;  %428 = vmatpush.msra.mxu0 %v354_v31  ;;  %451 = vmatpush.msra.mxu1 %v355_v32  ;;  %v323_v36 = vpop.permute.xlu0 %322  ;;  %v204_v31 = vld [vmem:[%s1186_s3] ss:$8 sm:$0x3] }
  0x92   : > { %v327_v37 = vsel %vm326_vm3, %v323_v36, %v325_v35  ;;  %v328_v38 = vsel %vm326_vm3, %v325_v35, %v323_v36 }
  0x93   : > { %v336_v39 = vmul.f32 %v332_v33, %v327_v37  ;;  %v337_v40 = vmul.f32 %v333_v34, %v328_v38  ;;  %v826_v33 = vld [vmem:[%s1186_s3 + $0x1] ss:$8 sm:$0x3]  ;;  %v206_v37 = vperm.slane %v204_v31, 0  ;;  %v207_v38 = vperm.slane %v204_v31, 1 }
  0x94   : > { %v214_v41 = vperm.slane %v826_v33, 1 }
  0x95   : > { %429 = vmatpush.msra.mxu0 %v336_v39  ;;  %452 = vmatpush.msra.mxu1 %v337_v40  ;;  %v213_v40 = vperm.slane %v826_v33, 0 }
  0x97   : > { %430 = vmatpush.msra.mxu0 %v932_v0  ;;  %453 = vmatpush.msra.mxu1 %v940_v1 }
  0x99   : > { %v285_v48 = vpop.permute.xlu1 %284  ;;  %v305_v49 = vpop.permute.xlu0 %304 }
  0x9a   : > { %v307_v50 = vsel %vm306_vm4, %v303_v30, %v305_v49  ;;  %v308_v51 = vsel %vm306_vm4, %v305_v49, %v303_v30  ;;  %v289_v52 = vsel %vm288_vm5, %v285_v48, %v287_v45  ;;  %v290_v53 = vsel %vm288_vm5, %v287_v45, %v285_v48 }
  0x9b   : > { %v316_v54 = vmul.f32 %v312_v43, %v308_v51  ;;  %v317_v55 = vmul.f32 %v313_v44, %v307_v50  ;;  %v298_v56 = vmul.f32 %v294_v46, %v290_v53  ;;  %v299_v57 = vmul.f32 %v295_v47, %v289_v52  ;;  %v202_v50 = vld [vmem:[%s1185_s2 + $0x8] sm:$0xff]  ;;  %v848_v52 = vld [vmem:[%s1184_s1 + $0x10] ss:$8 sm:$0x3] }
  0x9c   : > { %v624_v53 = vperm.slane %v848_v52, 0 }
  0x9d   : > { %431 = vmatpush.msra.mxu0 %v316_v54  ;;  %454 = vmatpush.msra.mxu1 %v317_v55  ;;  %v625_v54 = vperm.slane %v848_v52, 1 }
  0x9f   : > { %432 = vmatpush.msra.mxu0 %v298_v56  ;;  %455 = vmatpush.msra.mxu1 %v299_v57 }
  0xa1   : > { %v269_v61 = vpop.permute.xlu1 %268  ;;  %v267_v62 = vpop.permute.xlu0 %266 }
  0xa2   : > { %v271_v63 = vsel %vm270_vm6, %v267_v62, %v269_v61  ;;  %v272_v0 = vsel %vm270_vm6, %v269_v61, %v267_v62  ;;  %v847_v61 = vld [vmem:[%s1184_s1 + $0x7] ss:$8 sm:$0x3] }
  0xa3   : > { %v280_v1 = vmul.f32 %v276_v59, %v272_v0  ;;  %v281_v2 = vmul.f32 %v277_v60, %v271_v63  ;;  %v608_v62 = vperm.slane %v847_v61, 0  ;;  %v609_v63 = vperm.slane %v847_v61, 1 }
  0xa5   : > { %433 = vmatpush.msra.mxu0 %v280_v1  ;;  %456 = vmatpush.msra.mxu1 %v281_v2 }
  0xa9   : > { %v250_v8 = vpop.permute.xlu0 %249 }
  0xaa   : > { %v254_v9 = vsel %vm253_vm7, %v248_v4, %v250_v8  ;;  %v255_v10 = vsel %vm253_vm7, %v250_v8, %v248_v4 }
  0xab   : > { %v262_v11 = vmul.f32 %v258_v5, %v255_v10  ;;  %v263_v12 = vmul.f32 %v259_v7, %v254_v9  ;;  %v846_v5 = vld [vmem:[%s1184_s1 + $0x6] ss:$8 sm:$0x3] }
  0xac   : > { %v592_v7 = vperm.slane %v846_v5, 0  ;;  %v593_v8 = vperm.slane %v846_v5, 1 }
  0xad   : > { %434 = vmatpush.msra.mxu0 %v262_v11  ;;  %457 = vmatpush.msra.mxu1 %v263_v12 }
  0xae   : > { %838 = vmatmul.msk.f32.vlgmr.msra.gmra.mxu0 %vm412_vm8, %v201_v13  ;;  %840 = vmatmul.msk.f32.vlgmr.msra.gmra.mxu1 %vm412_vm8, %v201_v13 }
  0xb6   : > { %839 = vmatmul.msk.f32.gmra.mxu0 %vm412_vm8, %v202_v50  ;;  %841 = vmatmul.msk.f32.gmra.mxu1 %vm412_vm8, %v202_v50 }
 0x12b   : > { %v436_v14 = vpop.f32.mrf.mxu0  ;;  %v459_v15 = vpop.f32.mrf.mxu1 }
 0x12c   : > { %v465_v16 = vadd.f32 %v459_v15, %v436_v14  ;;  %v468_v17 = vmul.f32 %v436_v14, %v436_v14  ;;  %v469_v18 = vmul.f32 %v459_v15, %v459_v15 }
 0x12e   : > { %466 = vadd.xlane.f32.xlu1 %v465_v16  ;;  %v470_v19 = vadd.f32 %v469_v18, %v468_v17 }
 0x130   : > { %471 = vadd.xlane.f32.xlu2 %v470_v19 }
 0x1a1   : > { %v467_v20 = vpop.xlane.xlu1 %466 }
 0x1a2   : > { %v473_v21 = vmul.f32 0.00390625, %v467_v20 }
 0x1a3   : > { %v472_v22 = vpop.xlane.xlu2 %471 }
 0x1a4   : > { %v474_v23 = vmul.f32 0.00390625, %v472_v22  ;;  %v475_v24 = vmul.f32 %v473_v21, %v473_v21  ;;  %v477_v35 = vsub.f32 %v436_v14, %v473_v21  ;;  %v478_v36 = vsub.f32 %v459_v15, %v473_v21  ;;  %v845_v15 = vld [vmem:[%s1184_s1 + $0x5] ss:$8 sm:$0x3] }
 0x1a5   : > { %v576_v16 = vperm.slane %v845_v15, 0  ;;  %v577_v17 = vperm.slane %v845_v15, 1 }
 0x1a6   : > { %v476_v25 = vsub.f32 %v474_v23, %v475_v24 }
 0x1a8   : > { %v479_v26 = vadd.f32 1e-05, %v476_v25  ;;  %v844_v25 = vld [vmem:[%s1184_s1 + $0x3] ss:$8 sm:$0x3] }
 0x1a9   : > { %v559_v33 = vperm.slane %v844_v25, 1 }
 0x1aa   : > { %869 = vrsqrt.f32 %v479_v26  ;;  %vm486_vm10 = vweird.f32 %v479_v26 }
 0x1b0   : > { %v870_v27 = vpop.eup %869 }
 0x1b1   : > { %v481_v28 = vmul.f32 %v870_v27, %v479_v26  ;;  %vm487_vm9 = vweird.f32 %v870_v27  ;;  %v1121_v26 = vpop.f32.mrf.mxu0 }
 0x1b2   : > { %vm488_vm11 = vmor %vm486_vm10, %vm487_vm9  ;;  %v727_v6 = vmul.f32 %v1121_v26, %v1121_v26 }
 0x1b3   : > { %v482_v29 = vmul.f32 %v870_v27, %v481_v28  ;;  %v843_v28 = vld [vmem:[%s1184_s1 + $0x2] ss:$8 sm:$0x3] }
 0x1b5   : > { %v483_v30 = vmul.f32 0.5, %v482_v29 }
 0x1b7   : > { %v484_v32 = vsub.f32 1.5, %v483_v30 }
 0x1b9   : > { %v485_v34 = vmul.f32 %v870_v27, %v484_v32  ;;  %v558_v32 = vperm.slane %v844_v25, 0 }
 0x1bb   : > { %v489_v39 = vsel %vm488_vm11, %v870_v27, %v485_v34  ;;  %v1123_v27 = vpop.f32.mrf.mxu1 }
 0x1bc   : > { %v490_v42 = vmul.f32 %v489_v39, %v477_v35  ;;  %v491_v43 = vmul.f32 %v489_v39, %v478_v36  ;;  %v724_v29 = vadd.f32 %v1123_v27, %v1121_v26  ;;  %v542_v35 = vperm.slane %v843_v28, 0 }
 0x1bd   : > { %v543_v36 = vperm.slane %v843_v28, 1  ;;  %v728_v5 = vmul.f32 %v1123_v27, %v1123_v27 }
 0x1be   : > { %v492_v44 = vmul.f32 %v490_v42, %v206_v37  ;;  %v493_v45 = vmul.f32 %v491_v43, %v207_v38  ;;  %v842_v43 = vld [vmem:[%s1184_s1 + $0x1] ss:$8 sm:$0x3] }
 0x1c0   : > { %v494_v46 = vadd.f32 %v492_v44, %v213_v40  ;;  %v495_v47 = vadd.f32 %v493_v45, %v214_v41 }
 0x1c2   : > { %v1047_v48 = vmax.f32 %v494_v46, 0.0  ;;  %v1049_v49 = vmax.f32 %v495_v47, 0.0  ;;  %v526_v46 = vperm.slane %v842_v43, 0  ;;  %v527_v47 = vperm.slane %v842_v43, 1 }
 0x1c4   : > { %586 = vrot.lane.b32.xlu2 %v1049_v49, %s885_s24  ;;  %568 = vrot.lane.b32.xlu1 %v1047_v48, %s886_s25 }
 0x1c5   : > { %616 = vrot.lane.b32.xlu0 %v1047_v48, %s884_s23 }
 0x1cc   : > { %534 = vrot.lane.b32.xlu2 %v1047_v48, %s888_s27  ;;  %536 = vrot.lane.b32.xlu1 %v1049_v49, %s888_s27 }
 0x1cd   : > { %618 = vrot.lane.b32.xlu0 %v1049_v49, %s884_s23 }
 0x1d4   : > { %520 = vrot.lane.b32.xlu2 %v1049_v49, %s889_s28  ;;  %502 = vrot.lane.b32.xlu1 %v1047_v48, %s890_s29 }
 0x1d5   : > { %600 = vrot.lane.b32.xlu0 %v1047_v48, %s883_s22 }
 0x1dd   : > { %602 = vrot.lane.b32.xlu0 %v1049_v49, %s883_s22 }
 0x1e5   : > { %584 = vrot.lane.b32.xlu0 %v1047_v48, %s885_s24 }
 0x1ed   : > { %570 = vrot.lane.b32.xlu0 %v1049_v49, %s886_s25 }
 0x1f5   : > { %550 = vrot.lane.b32.xlu0 %v1047_v48, %s887_s26 }
 0x1fd   : > { %552 = vrot.lane.b32.xlu0 %v1049_v49, %s887_s26 }
 0x1fe   : > { %725 = vadd.xlane.f32.xlu1 %v724_v29 }
 0x205   : > { %518 = vrot.lane.b32.xlu0 %v1047_v48, %s889_s28 }
 0x20d   : > { %504 = vrot.lane.b32.xlu0 %v1049_v49, %s890_s29  ;;  %s199_s29 = scalar_lea.vmem %s1187_s4, %s823_s18 }
 0x21e   : > { %v587_v9 = vpop.permute.xlu2 %586 }
 0x226   : > { %v535_v30 = vpop.permute.xlu2 %534 }
 0x236   : > { %v569_v18 = vpop.permute.xlu1 %568 }
 0x237   : > { %v617_v51 = vpop.permute.xlu0 %616 }
 0x23e   : > { %v537_v31 = vpop.permute.xlu1 %536 }
 0x23f   : > { %v619_v55 = vpop.permute.xlu0 %618  ;;  %v538_v37 = vsel %vm288_vm5, %v535_v30, %v537_v31  ;;  %v539_v38 = vsel %vm288_vm5, %v537_v31, %v535_v30 }
 0x240   : > { %v620_v56 = vsel %vm380_vm1, %v617_v51, %v619_v55  ;;  %v621_v57 = vsel %vm380_vm1, %v619_v55, %v617_v51  ;;  %v546_v44 = vmul.f32 %v542_v35, %v539_v38  ;;  %v547_v45 = vmul.f32 %v543_v36, %v538_v37 }
 0x241   : > { %v628_v58 = vmul.f32 %v624_v53, %v620_v56  ;;  %v629_v59 = vmul.f32 %v625_v54, %v621_v57  ;;  %v508_v54 = vld [vmem:[%s1184_s1] ss:$8 sm:$0x3] }
 0x242   : > { %v510_v55 = vperm.slane %v508_v54, 0  ;;  %v511_v56 = vperm.slane %v508_v54, 1 }
 0x243   : > { %660 = vmatpush.msra.mxu2 %v628_v58  ;;  %680 = vmatpush.msra.mxu3 %v629_v59 }
 0x246   : > { %v503_v57 = vpop.permute.xlu1 %502 }
 0x247   : > { %v601_v60 = vpop.permute.xlu0 %600 }
 0x24f   : > { %v603_v0 = vpop.permute.xlu0 %602 }
 0x250   : > { %v604_v1 = vsel %vm362_vm0, %v601_v60, %v603_v0  ;;  %v605_v2 = vsel %vm362_vm0, %v603_v0, %v601_v60 }
 0x251   : > { %v612_v3 = vmul.f32 %v608_v62, %v604_v1  ;;  %v613_v4 = vmul.f32 %v609_v63, %v605_v2  ;;  %v203_v63 = vld [vmem:[%s1185_s2 + $0x10] sm:$0xff] }
 0x253   : > { %661 = vmatpush.msra.mxu2 %v612_v3  ;;  %681 = vmatpush.msra.mxu3 %v613_v4 }
 0x257   : > { %v585_v10 = vpop.permute.xlu0 %584 }
 0x258   : > { %v588_v11 = vsel %vm344_vm2, %v585_v10, %v587_v9  ;;  %v589_v12 = vsel %vm344_vm2, %v587_v9, %v585_v10 }
 0x259   : > { %v596_v13 = vmul.f32 %v592_v7, %v588_v11  ;;  %v597_v14 = vmul.f32 %v593_v8, %v589_v12  ;;  %v729_v8 = vadd.f32 %v728_v5, %v727_v6 }
 0x25b   : > { %662 = vmatpush.msra.mxu2 %v596_v13  ;;  %682 = vmatpush.msra.mxu3 %v597_v14 }
 0x25f   : > { %v571_v19 = vpop.permute.xlu0 %570 }
 0x260   : > { %v572_v20 = vsel %vm326_vm3, %v569_v18, %v571_v19  ;;  %v573_v21 = vsel %vm326_vm3, %v571_v19, %v569_v18 }
 0x261   : > { %v580_v22 = vmul.f32 %v576_v16, %v572_v20  ;;  %v581_v23 = vmul.f32 %v577_v17, %v573_v21 }
 0x263   : > { %663 = vmatpush.msra.mxu2 %v580_v22  ;;  %683 = vmatpush.msra.mxu3 %v581_v23 }
 0x265   : > { %664 = vmatpush.msra.mxu2 %v1047_v48  ;;  %684 = vmatpush.msra.mxu3 %v1049_v49  ;;  %v521_v48 = vpop.permute.xlu2 %520 }
 0x267   : > { %v551_v24 = vpop.permute.xlu0 %550 }
 0x26f   : > { %v553_v34 = vpop.permute.xlu0 %552 }
 0x270   : > { %v554_v39 = vsel %vm306_vm4, %v551_v24, %v553_v34  ;;  %v555_v40 = vsel %vm306_vm4, %v553_v34, %v551_v24  ;;  %v827_v34 = vld [vmem:[%s1186_s3 + $0x2] ss:$8 sm:$0x3] }
 0x271   : > { %v562_v41 = vmul.f32 %v558_v32, %v555_v40  ;;  %v563_v42 = vmul.f32 %v559_v33, %v554_v39  ;;  %v726_v11 = vpop.xlane.xlu1 %725  ;;  %v828_v39 = vld [vmem:[%s1186_s3 + $0x3] ss:$8 sm:$0x3]  ;;  %v829_v40 = vld [vmem:[%s1186_s3 + $0x4] ss:$8 sm:$0x3] }
 0x272   : > { %v732_v15 = vmul.f32 0.00390625, %v726_v11  ;;  %v221_v43 = vperm.slane %v827_v34, 1 }
 0x273   : > { %665 = vmatpush.msra.mxu2 %v562_v41  ;;  %685 = vmatpush.msra.mxu3 %v563_v42  ;;  %v220_v42 = vperm.slane %v827_v34, 0 }
 0x274   : > { %v734_v18 = vmul.f32 %v732_v15, %v732_v15 }
 0x275   : > { %666 = vmatpush.msra.mxu2 %v546_v44  ;;  %686 = vmatpush.msra.mxu3 %v547_v45 }
 0x277   : > { %v519_v49 = vpop.permute.xlu0 %518 }
 0x278   : > { %v522_v50 = vsel %vm270_vm6, %v519_v49, %v521_v48  ;;  %v523_v51 = vsel %vm270_vm6, %v521_v48, %v519_v49  ;;  %v737_v49 = vsub.f32 %v1123_v27, %v732_v15 }
 0x279   : > { %v530_v52 = vmul.f32 %v526_v46, %v523_v51  ;;  %v531_v53 = vmul.f32 %v527_v47, %v522_v50  ;;  %v830_v46 = vld [vmem:[%s1186_s3 + $0x5] ss:$8 sm:$0x3]  ;;  %v736_v47 = vsub.f32 %v1121_v26, %v732_v15  ;;  %v227_v50 = vperm.slane %v828_v39, 0 }
 0x27a   : > { %v234_v51 = vperm.slane %v829_v40, 0  ;;  %v241_v54 = vperm.slane %v830_v46, 0 }
 0x27b   : > { %667 = vmatpush.msra.mxu2 %v530_v52  ;;  %687 = vmatpush.msra.mxu3 %v531_v53  ;;  %v235_v52 = vperm.slane %v829_v40, 1  ;;  %v228_v53 = vperm.slane %v828_v39, 1 }
 0x27f   : > { %v505_v58 = vpop.permute.xlu0 %504 }
 0x280   : > { %v506_v59 = vsel %vm253_vm7, %v503_v57, %v505_v58  ;;  %v507_v60 = vsel %vm253_vm7, %v505_v58, %v503_v57 }
 0x281   : > { %v514_v61 = vmul.f32 %v510_v55, %v507_v60  ;;  %v515_v62 = vmul.f32 %v511_v56, %v506_v59  ;;  %v242_v55 = vperm.slane %v830_v46, 1 }
 0x283   : > { %668 = vmatpush.msra.mxu2 %v514_v61  ;;  %688 = vmatpush.msra.mxu3 %v515_v62 }
 0x284   : > { %849 = vmatmul.msk.f32.vlgmr.msra.gmra.mxu2 %vm412_vm8, %v203_v63  ;;  %850 = vmatmul.msk.f32.vlgmr.msra.gmra.mxu3 %vm412_vm8, %v203_v63 }
 0x307   : > { %v670_v0 = vpop.f32.mrf.mxu2  ;;  %v690_v1 = vpop.f32.mrf.mxu3 }
 0x308   : > { %v696_v2 = vmul.f32 %v670_v0, %v670_v0  ;;  %v697_v3 = vmul.f32 %v690_v1, %v690_v1  ;;  %v693_v4 = vadd.f32 %v690_v1, %v670_v0 }
 0x30a   : > { %694 = vadd.xlane.f32.xlu2 %v693_v4  ;;  %v698_v7 = vadd.f32 %v697_v3, %v696_v2 }
 0x30c   : > { %699 = vadd.xlane.f32.xlu0 %v698_v7 }
 0x312   : > { %730 = vadd.xlane.f32.xlu2 %v729_v8 }
 0x37d   : > { %v695_v9 = vpop.xlane.xlu2 %694 }
 0x37e   : > { %v701_v10 = vmul.f32 0.00390625, %v695_v9 }
 0x37f   : > { %v700_v12 = vpop.xlane.xlu0 %699 }
 0x380   : > { %v702_v13 = vmul.f32 0.00390625, %v700_v12  ;;  %v703_v14 = vmul.f32 %v701_v10, %v701_v10  ;;  %v705_v37 = vsub.f32 %v670_v0, %v701_v10  ;;  %v706_v38 = vsub.f32 %v690_v1, %v701_v10 }
 0x382   : > { %v704_v16 = vsub.f32 %v702_v13, %v703_v14 }
 0x384   : > { %v707_v17 = vadd.f32 1e-05, %v704_v16 }
 0x385   : > { %v731_v19 = vpop.xlane.xlu2 %730 }
 0x386   : > { %871 = vrsqrt.f32 %v707_v17  ;;  %v733_v20 = vmul.f32 0.00390625, %v731_v19  ;;  %vm714_vm13 = vweird.f32 %v707_v17 }
 0x388   : > { %v735_v21 = vsub.f32 %v733_v20, %v734_v18 }
 0x38a   : > { %v738_v22 = vadd.f32 1e-05, %v735_v21 }
 0x38c   : > { %v872_v23 = vpop.eup %871  ;;  %873 = vrsqrt.f32 %v738_v22  ;;  %vm745_vm0 = vweird.f32 %v738_v22 }
 0x38d   : > { %v709_v24 = vmul.f32 %v872_v23, %v707_v17  ;;  %vm715_vm12 = vweird.f32 %v872_v23 }
 0x38e   : > { %vm716_vm14 = vmor %vm714_vm13, %vm715_vm12 }
 0x38f   : > { %v710_v25 = vmul.f32 %v872_v23, %v709_v24 }
 0x391   : > { %v711_v28 = vmul.f32 0.5, %v710_v25 }
 0x392   : > { %v874_v29 = vpop.eup %873 }
 0x393   : > { %v712_v30 = vsub.f32 1.5, %v711_v28  ;;  %v740_v31 = vmul.f32 %v874_v29, %v738_v22  ;;  %vm746_vm15 = vweird.f32 %v874_v29 }
 0x394   : > { %vm747_vm1 = vmor %vm745_vm0, %vm746_vm15 }
 0x395   : > { %v713_v32 = vmul.f32 %v872_v23, %v712_v30  ;;  %v741_v33 = vmul.f32 %v874_v29, %v740_v31 }
 0x397   : > { %v717_v35 = vsel %vm716_vm14, %v872_v23, %v713_v32  ;;  %v742_v36 = vmul.f32 0.5, %v741_v33 }
 0x398   : > { %v718_v44 = vmul.f32 %v717_v35, %v705_v37  ;;  %v719_v45 = vmul.f32 %v717_v35, %v706_v38 }
 0x399   : > { %v743_v41 = vsub.f32 1.5, %v742_v36 }
 0x39a   : > { %v720_v57 = vmul.f32 %v718_v44, %v220_v42  ;;  %v721_v58 = vmul.f32 %v719_v45, %v221_v43 }
 0x39b   : > { %v744_v48 = vmul.f32 %v874_v29, %v743_v41 }
 0x39c   : > { %v722_v26 = vadd.f32 %v720_v57, %v227_v50  ;;  %v723_v63 = vadd.f32 %v721_v58, %v228_v53 }
 0x39d   : > { %v748_v56 = vsel %vm747_vm1, %v874_v29, %v744_v48 }
 0x39e   : > { %v749_v59 = vmul.f32 %v748_v56, %v736_v47  ;;  %v750_v60 = vmul.f32 %v748_v56, %v737_v49 }
 0x3a0   : > { %v751_v61 = vmul.f32 %v749_v59, %v234_v51  ;;  %v752_v62 = vmul.f32 %v750_v60, %v235_v52 }
 0x3a2   : > { %v753_v0 = vadd.f32 %v751_v61, %v241_v54  ;;  %v754_v1 = vadd.f32 %v752_v62, %v242_v55 }
 0x3a4   : > { %v755_v27 = vadd.f32 %v753_v0, %v722_v26  ;;  %v756_v2 = vadd.f32 %v754_v1, %v723_v63 }
 0x3a6   : > { %v757_v3 = vmax.f32 %v755_v27, 0.0  ;;  %v758_v4 = vmax.f32 %v756_v2, 0.0 }
 0x3a8   : > { %759 = vst [vmem:[%s199_s29] sm:$0xff] %v757_v3 }
 0x3a9   : > { %760 = vst [vmem:[%s199_s29 + $0x8] sm:$0xff] %v758_v4 }
 0x3aa PF: > { %s14_s15 = sadd.s32 1, %s881_s15  }
 0x3ab   : > { %p11_p4 = scmp.ge.s32.totalorder %s14_s15, 4  }
 0x3ad   :  { %13 = sbr.rel (!%p11_p4) target bundleno = 1 (0x1), region = 78 }

</bundles_post_ra>
